<compile_context>
chip_gen: v5e
topology: v5e:2x2
jax: 0.10.0
libtpu: 0.0.40
codegen_flags: <defaults>
</compile_context>

<pallas_src>
import functools

import jax
import jax.numpy as jnp
from jax import lax
from jax.experimental import pallas as pl
from jax.experimental.pallas import tpu as pltpu


def _softmax_loss_kernel(x_ref, w_ref, b_ref, lb_ref, out_ref, m_sc, l_sc, t_sc):
    """One (N-tile, C-tile) grid step of online-LSE cross-entropy."""
    kc = pl.program_id(1)

    # Re-initialize the per-row accumulators at the start of every C sweep.
    @pl.when(kc == 0)
    def _():
        m_sc[...] = jnp.full_like(m_sc, -jnp.inf)
        l_sc[...] = jnp.zeros_like(l_sc)
        t_sc[...] = jnp.zeros_like(t_sc)

    # MXU: bf16 x [tn, E] @ bf16 W_t [E, tc] -> f32 [tn, tc]; bias added in f32.
    logits = jnp.dot(x_ref[...], w_ref[...],
                     preferred_element_type=jnp.float32) + b_ref[...]

    tc = logits.shape[-1]
    # Target-logit gather using GLOBAL class ids for this C tile (exactly one tile
    # contains each label, so the accumulation picks up the target logit once).
    cls_ids = kc * tc + lax.broadcasted_iota(jnp.int32, logits.shape, 1)   # [tn, tc]
    labels = lb_ref[...]                                                   # [tn, 1] i32
    t_sc[...] += jnp.sum(jnp.where(cls_ids == labels, logits, 0.0),
                         axis=-1, keepdims=True)

    # Online (running) logsumexp update.
    m_prev = m_sc[...]
    m_new = jnp.maximum(m_prev, jnp.max(logits, axis=-1, keepdims=True))
    l_sc[...] = (l_sc[...] * jnp.exp(m_prev - m_new)
                 + jnp.sum(jnp.exp(logits - m_new), axis=-1, keepdims=True))
    m_sc[...] = m_new

    # Finalize: per-example loss = logsumexp(logits) - logits[target].
    @pl.when(kc == pl.num_programs(1) - 1)
    def _():
        out_ref[...] = (m_sc[...] + jnp.log(l_sc[...])) - t_sc[...]


def _vmem_limit_bytes(tn, tc, e):
    """Derive a VMEM budget from the actual tile footprint (2 buffers per operand)."""
    bf16, f32, i32 = 2, 4, 4
    per_step = (tn * e * bf16        # x tile
                + e * tc * bf16      # W_t tile (dominant bytes)
                + tc * f32           # bias tile
                + tn * i32           # labels tile
                + tn * f32)          # per-example output tile
    need = 2 * per_step              # double-buffered pipeline
    need += 3 * tn * f32             # online-LSE scratch (m, l, tgt)
    need += 2 * tn * tc * f32        # logits / exp temporaries
    need += 4 << 20                  # compiler headroom
    try:
        phys = pltpu.get_tpu_info().vmem_capacity_bytes
    except Exception:
        phys = 64 << 20              # conservative floor (v7x per-TensorCore)
    return int(max(16 << 20, min(need, (phys * 3) // 4)))


@functools.partial(jax.jit, static_argnames=("tn", "tc"))
def model_parallel_softmax_loss(x, labels, weight_t, bias, *, tn=None, tc=None):
    """x: [N, E], labels: [N] int, weight_t: [E, C], bias: [C] -> scalar f32 loss."""
    n, e = x.shape
    c = weight_t.shape[1]

    # Tile selection: MXU/lane-aligned defaults, clamped to the problem size.
    if tn is None:
        tn = min(n, 256)
    if tc is None:
        tc = min(c, 512)
    assert n % tn == 0 and c % tc == 0, "pad N / C to tile multiples"
    assert tc % 128 == 0 or tc == c, "C tile must be lane-aligned"

    x_bf = x.astype(jnp.bfloat16)
    w_bf = weight_t.astype(jnp.bfloat16)
    bias2d = bias.reshape(1, c).astype(jnp.float32)
    labels2d = labels.astype(jnp.int32).reshape(n, 1)

    grid = (n // tn, c // tc)

    per_example = pl.pallas_call(
        _softmax_loss_kernel,
        out_shape=jax.ShapeDtypeStruct((n, 1), jnp.float32),
        grid_spec=pltpu.PrefetchScalarGridSpec(
            num_scalar_prefetch=0,
            grid=grid,
            in_specs=[
                pl.BlockSpec((tn, e), lambda i, k: (i, 0)),    # x: resident across C
                pl.BlockSpec((e, tc), lambda i, k: (0, k)),    # W_t: streamed over C
                pl.BlockSpec((1, tc), lambda i, k: (0, k)),    # bias tile
                pl.BlockSpec((tn, 1), lambda i, k: (i, 0)),    # labels per N tile
            ],
            out_specs=pl.BlockSpec((tn, 1), lambda i, k: (i, 0)),
            scratch_shapes=[
                pltpu.VMEM((tn, 1), jnp.float32),   # running max m
                pltpu.VMEM((tn, 1), jnp.float32),   # running sum-of-exp l
                pltpu.VMEM((tn, 1), jnp.float32),   # target logit accumulator
            ],
        ),
        compiler_params=pltpu.CompilerParams(
            dimension_semantics=("parallel", "arbitrary"),
            vmem_limit_bytes=_vmem_limit_bytes(tn, tc, e),
        ),
    )(x_bf, w_bf, bias2d, labels2d)

    return jnp.mean(per_example)


if __name__ == "__main__":
    # Small shapes consistent with the module's forward: [N, embedding_size] features,
    # [N] integer class labels. tc=128 so the online-LSE C sweep (grid=(1, 4)) is exercised.
    N, EMBEDDING_SIZE, NUM_CLASSES = 8, 32, 512

    key = jax.random.PRNGKey(0)
    kx, kl = jax.random.split(key)
    x = jax.random.normal(kx, (N, EMBEDDING_SIZE), dtype=jnp.float32)
    labels = jax.random.randint(kl, (N,), 0, NUM_CLASSES, dtype=jnp.int32)

    # Deterministic parameter init mirroring sailfish.Linear(..., ZerosInitializer(),
    # OnesInitializer()): weight = zeros [C, E] (stored transposed [E, C]), bias = ones [C].
    weight_t = jnp.zeros((EMBEDDING_SIZE, NUM_CLASSES), dtype=jnp.float32)
    bias = jnp.ones((NUM_CLASSES,), dtype=jnp.float32)

    loss = model_parallel_softmax_loss(x, labels, weight_t, bias, tn=8, tc=128)
    loss = jax.block_until_ready(loss)

    # Reference in plain JAX with the same bf16 MXU-input precision.
    logits_ref = (x.astype(jnp.bfloat16) @ weight_t.astype(jnp.bfloat16)
                  ).astype(jnp.float32) + bias
    lse_ref = jax.nn.logsumexp(logits_ref, axis=-1)
    ref = jnp.mean(lse_ref - logits_ref[jnp.arange(N), labels])
    assert jnp.allclose(loss, ref, atol=1e-5, rtol=1e-5), (loss, ref)

    print("KERNEL_OK")
</pallas_src>

<mosaic_0001>
module attributes {stable_mosaic.version = 11 : i64} {
  func.func @_softmax_loss_kernel(%arg0: i32, %arg1: i32, %arg2: memref<8x32xbf16, #tpu.memory_space<vmem>>, %arg3: memref<32x128xbf16, #tpu.memory_space<vmem>>, %arg4: memref<1x128xf32, #tpu.memory_space<vmem>>, %arg5: memref<8x1xi32, #tpu.memory_space<vmem>>, %arg6: memref<8x1xf32, #tpu.memory_space<vmem>>, %arg7: memref<8x1xf32, #tpu.memory_space<vmem>>, %arg8: memref<8x1xf32, #tpu.memory_space<vmem>>, %arg9: memref<8x1xf32, #tpu.memory_space<vmem>>) attributes {dimension_semantics = [#tpu.dimension_semantics<parallel>, #tpu.dimension_semantics<arbitrary>], iteration_bounds = array<i64: 1, 4>, scalar_prefetch = 0 : i64, scratch_operands = 3 : i64, tpu.core_type = #tpu.core_type<tc>, window_params = [{transform_indices = @transform_0, window_bounds = array<i64: 8, 32>}, {transform_indices = @transform_1, window_bounds = array<i64: 32, 128>}, {transform_indices = @transform_2, window_bounds = array<i64: 1, 128>}, {transform_indices = @transform_3, window_bounds = array<i64: 8, 1>}, {transform_indices = @transform_4, window_bounds = array<i64: 8, 1>}]} {
    %c0_i32 = arith.constant 0 : i32
    %0 = arith.cmpi eq, %arg1, %c0_i32 : i32
    %1 = arith.extui %0 : i1 to i32
    %c0_i32_0 = arith.constant 0 : i32
    %2 = arith.cmpi ne, %1, %c0_i32_0 : i32
    scf.if %2 {
      %cst_25 = arith.constant 0xFF800000 : f32
      %42 = vector.broadcast %cst_25 : f32 to vector<8x1xf32>
      %c0_26 = arith.constant 0 : index
      %c0_27 = arith.constant 0 : index
      %43 = vector.load %arg7[%c0_26, %c0_27] : memref<8x1xf32, #tpu.memory_space<vmem>>, vector<8x1xf32>
      tpu.vector_store %arg7[%c0_26, %c0_27], %42 {strides = array<i32>} : memref<8x1xf32, #tpu.memory_space<vmem>>, vector<8x1xf32>,
      %cst_28 = arith.constant 0.000000e+00 : f32
      %44 = vector.broadcast %cst_28 : f32 to vector<8x1xf32>
      %c0_29 = arith.constant 0 : index
      %c0_30 = arith.constant 0 : index
      %45 = vector.load %arg8[%c0_29, %c0_30] : memref<8x1xf32, #tpu.memory_space<vmem>>, vector<8x1xf32>
      tpu.vector_store %arg8[%c0_29, %c0_30], %44 {strides = array<i32>} : memref<8x1xf32, #tpu.memory_space<vmem>>, vector<8x1xf32>,
      %cst_31 = arith.constant 0.000000e+00 : f32
      %46 = vector.broadcast %cst_31 : f32 to vector<8x1xf32>
      %c0_32 = arith.constant 0 : index
      %c0_33 = arith.constant 0 : index
      %47 = vector.load %arg9[%c0_32, %c0_33] : memref<8x1xf32, #tpu.memory_space<vmem>>, vector<8x1xf32>
      tpu.vector_store %arg9[%c0_32, %c0_33], %46 {strides = array<i32>} : memref<8x1xf32, #tpu.memory_space<vmem>>, vector<8x1xf32>,
    } else {
    }
    %c0 = arith.constant 0 : index
    %c0_1 = arith.constant 0 : index
    %3 = vector.load %arg2[%c0, %c0_1] : memref<8x32xbf16, #tpu.memory_space<vmem>>, vector<8x32xbf16>
    %c0_2 = arith.constant 0 : index
    %c0_3 = arith.constant 0 : index
    %4 = vector.load %arg3[%c0_2, %c0_3] : memref<32x128xbf16, #tpu.memory_space<vmem>>, vector<32x128xbf16>
    %cst = arith.constant dense<0.000000e+00> : vector<8x128xf32>
    %5 = tpu.matmul %3, %4, %cst {dimension_numbers = #tpu.dot_dimension_numbers<[1], [0], [0], [1], [0, 0, 1, 1], [], []>} : vector<8x32xbf16>, vector<32x128xbf16>, vector<8x128xf32> -> vector<8x128xf32>
    %c0_4 = arith.constant 0 : index
    %c0_5 = arith.constant 0 : index
    %6 = vector.load %arg4[%c0_4, %c0_5] : memref<1x128xf32, #tpu.memory_space<vmem>>, vector<1x128xf32>
    %7 = vector.broadcast %6 : vector<1x128xf32> to vector<8x128xf32>
    %8 = arith.addf %5, %7 : vector<8x128xf32>
    %c128_i32 = arith.constant 128 : i32
    %9 = arith.muli %arg1, %c128_i32 : i32
    %10 = tpu.iota {dimensions = array<i32: 1>} : vector<8x128xi32>
    %11 = vector.broadcast %9 : i32 to vector<8x128xi32>
    %12 = arith.addi %11, %10 : vector<8x128xi32>
    %c0_6 = arith.constant 0 : index
    %c0_7 = arith.constant 0 : index
    %13 = vector.load %arg5[%c0_6, %c0_7] : memref<8x1xi32, #tpu.memory_space<vmem>>, vector<8x1xi32>
    %c0_8 = arith.constant 0 : index
    %c0_9 = arith.constant 0 : index
    %14 = vector.load %arg9[%c0_8, %c0_9] : memref<8x1xf32, #tpu.memory_space<vmem>>, vector<8x1xf32>
    %15 = vector.broadcast %13 : vector<8x1xi32> to vector<8x128xi32>
    %16 = arith.cmpi eq, %12, %15 : vector<8x128xi32>
    %cst_10 = arith.constant 0.000000e+00 : f32
    %17 = vector.broadcast %cst_10 : f32 to vector<8x128xf32>
    %18 = arith.select %16, %8, %17 : vector<8x128xi1>, vector<8x128xf32>
    %cst_11 = arith.constant dense<0.000000e+00> : vector<8xf32>
    %19 = vector.multi_reduction <add>, %18, %cst_11 [1] : vector<8x128xf32> to vector<8xf32>
    %20 = vector.shape_cast %19 : vector<8xf32> to vector<8x1xf32>
    %21 = arith.addf %14, %20 : vector<8x1xf32>
    %c0_12 = arith.constant 0 : index
    %c0_13 = arith.constant 0 : index
    %22 = vector.load %arg9[%c0_12, %c0_13] : memref<8x1xf32, #tpu.memory_space<vmem>>, vector<8x1xf32>
    tpu.vector_store %arg9[%c0_12, %c0_13], %21 {strides = array<i32>} : memref<8x1xf32, #tpu.memory_space<vmem>>, vector<8x1xf32>,
    %c0_14 = arith.constant 0 : index
    %c0_15 = arith.constant 0 : index
    %23 = vector.load %arg7[%c0_14, %c0_15] : memref<8x1xf32, #tpu.memory_space<vmem>>, vector<8x1xf32>
    %cst_16 = arith.constant dense<0xFF800000> : vector<8xf32>
    %24 = vector.multi_reduction <maximumf>, %8, %cst_16 [1] : vector<8x128xf32> to vector<8xf32>
    %25 = vector.shape_cast %24 : vector<8xf32> to vector<8x1xf32>
    %26 = arith.maximumf %23, %25 : vector<8x1xf32>
    %c0_17 = arith.constant 0 : index
    %c0_18 = arith.constant 0 : index
    %27 = vector.load %arg8[%c0_17, %c0_18] : memref<8x1xf32, #tpu.memory_space<vmem>>, vector<8x1xf32>
    %28 = arith.subf %23, %26 : vector<8x1xf32>
    %29 = math.exp %28 : vector<8x1xf32>
    %30 = arith.mulf %27, %29 : vector<8x1xf32>
    %31 = vector.broadcast %26 : vector<8x1xf32> to vector<8x128xf32>
    %32 = arith.subf %8, %31 : vector<8x128xf32>
    %33 = math.exp %32 : vector<8x128xf32>
    %cst_19 = arith.constant dense<0.000000e+00> : vector<8xf32>
    %34 = vector.multi_reduction <add>, %33, %cst_19 [1] : vector<8x128xf32> to vector<8xf32>
    %35 = vector.shape_cast %34 : vector<8xf32> to vector<8x1xf32>
    %36 = arith.addf %30, %35 : vector<8x1xf32>
    %c0_20 = arith.constant 0 : index
    %c0_21 = arith.constant 0 : index
    %37 = vector.load %arg8[%c0_20, %c0_21] : memref<8x1xf32, #tpu.memory_space<vmem>>, vector<8x1xf32>
    tpu.vector_store %arg8[%c0_20, %c0_21], %36 {strides = array<i32>} : memref<8x1xf32, #tpu.memory_space<vmem>>, vector<8x1xf32>,
    %c0_22 = arith.constant 0 : index
    %c0_23 = arith.constant 0 : index
    %38 = vector.load %arg7[%c0_22, %c0_23] : memref<8x1xf32, #tpu.memory_space<vmem>>, vector<8x1xf32>
    tpu.vector_store %arg7[%c0_22, %c0_23], %26 {strides = array<i32>} : memref<8x1xf32, #tpu.memory_space<vmem>>, vector<8x1xf32>,
    %c3_i32 = arith.constant 3 : i32
    %39 = arith.cmpi eq, %arg1, %c3_i32 : i32
    %40 = arith.extui %39 : i1 to i32
    %c0_i32_24 = arith.constant 0 : i32
    %41 = arith.cmpi ne, %40, %c0_i32_24 : i32
    scf.if %41 {
      %c0_25 = arith.constant 0 : index
      %c0_26 = arith.constant 0 : index
      %42 = vector.load %arg7[%c0_25, %c0_26] : memref<8x1xf32, #tpu.memory_space<vmem>>, vector<8x1xf32>
      %c0_27 = arith.constant 0 : index
      %c0_28 = arith.constant 0 : index
      %43 = vector.load %arg8[%c0_27, %c0_28] : memref<8x1xf32, #tpu.memory_space<vmem>>, vector<8x1xf32>
      %44 = math.log %43 : vector<8x1xf32>
      %45 = arith.addf %42, %44 : vector<8x1xf32>
      %c0_29 = arith.constant 0 : index
      %c0_30 = arith.constant 0 : index
      %46 = vector.load %arg9[%c0_29, %c0_30] : memref<8x1xf32, #tpu.memory_space<vmem>>, vector<8x1xf32>
      %47 = arith.subf %45, %46 : vector<8x1xf32>
      %c0_31 = arith.constant 0 : index
      %c0_32 = arith.constant 0 : index
      %48 = vector.load %arg6[%c0_31, %c0_32] : memref<8x1xf32, #tpu.memory_space<vmem>>, vector<8x1xf32>
      tpu.vector_store %arg6[%c0_31, %c0_32], %47 {strides = array<i32>} : memref<8x1xf32, #tpu.memory_space<vmem>>, vector<8x1xf32>,
    } else {
    }
    return
  }
  func.func @transform_0(%arg0: i32, %arg1: i32) -> (i32, i32) {
    %c0_i32 = arith.constant 0 : i32
    %c0_i32_0 = arith.constant 0 : i32
    return %arg0, %c0_i32 : i32, i32
  }
  func.func @transform_1(%arg0: i32, %arg1: i32) -> (i32, i32) {
    %c0_i32 = arith.constant 0 : i32
    %c0_i32_0 = arith.constant 0 : i32
    return %c0_i32, %arg1 : i32, i32
  }
  func.func @transform_2(%arg0: i32, %arg1: i32) -> (i32, i32) {
    %c0_i32 = arith.constant 0 : i32
    %c0_i32_0 = arith.constant 0 : i32
    return %c0_i32, %arg1 : i32, i32
  }
  func.func @transform_3(%arg0: i32, %arg1: i32) -> (i32, i32) {
    %c0_i32 = arith.constant 0 : i32
    %c0_i32_0 = arith.constant 0 : i32
    return %arg0, %c0_i32 : i32, i32
  }
  func.func @transform_4(%arg0: i32, %arg1: i32) -> (i32, i32) {
    %c0_i32 = arith.constant 0 : i32
    %c0_i32_0 = arith.constant 0 : i32
    return %arg0, %c0_i32 : i32, i32
  }
}

</mosaic_0001>

<bundles_post_ra>
// kernel: model_parallel_softmax_loss.1
= control target key start
LH: loop header
LB: loop body
LE: loop exit
PB: predicated region body
PF: predicated region fallthrough
CT: control target
= control target key end

     0   :  { %s659_s15 = smov 0   ;;  %s661_s16 = smov 0   ;;  %s744_s0 = inlined_call_operand.vmem [shape: bf16[8,32], index: 0, kind: input, shape index: {}]   ;;  %s745_s1 = inlined_call_operand.vmem [shape: bf16[32,512], index: 1, kind: input, shape index: {}]   ;;  %s746_s2 = inlined_call_operand.vmem [shape: f32[1,512], index: 2, kind: input, shape index: {}]   ;;  %s747_s3 = inlined_call_operand.vmem [shape: s32[8,1], index: 3, kind: input, shape index: {}]   ;;  %s748_s4 = inlined_call_operand.vmem [shape: f32[8,1], index: 4, kind: output, shape index: {}]  }
   0x1   :  { %s663_s17 = smov 0   ;;  %s665_s18 = smov 0  }
   0x2   :  { %s667_s19 = smov 0  }
   0x3 LB: > { %s23_s20 = sadd.s32 1, %s625_s18  ;;  %p66_p1 = scmp.ne.s32.totalorder %s617_s16, %s613_s15  ;;  %s629_s19 = sphi %s667_s19, %s14_s19   ;;  %s625_s18 = sphi %s665_s18, %s752_s18   ;;  %s621_s17 = sphi %s663_s17, %s751_s17   ;;  %s617_s16 = sphi %s661_s16, %s750_s16   ;;  %s613_s15 = sphi %s659_s15, %s749_s15  }
   0x4   : > { %p24_p0 = scmp.ge.s32.totalorder %s23_s20, 4  ;;  %p67_p2 = scmp.eq.s32.totalorder %s629_s19, 0 }
   0x5   : > { %s59_s22 = sadd.s32 1, %s617_s16  ;;  %p517_p5 = scmp.ge.s32.totalorder %s629_s19, 4 }
   0x6   : > { %s754_s20 = smov (%p24_p0, %s23_s20), 0  ;;  %p68_p3 = por %p67_p2, %p66_p1 }
   0x7   : > { %s56_s21 = ssub.s32 %s625_s18, %s754_s20  ;;  %184 = sbr.rel (%p517_p5) target bundleno = 20 (0x14), region = 24 }
   0x8   : > { %p57_p4 = scmp.eq.s32.totalorder %s56_s21, 0 }
   0xa   : > { %s694_s23 = scalar_select %p57_p4, %s617_s16, %s59_s22  }
   0xc   : > { %187 = sbr.rel (!%p68_p3) target bundleno = 20 (0x14), region = 28  ;;  %s189_s24 = sand.u32 (%p68_p3), 1, %s617_s16  }
   0xd   : > { %s519_s25 = sshll.u32 (%p68_p3), %s625_s18, 2  ;;  %s518_s26 = sshll.u32 (%p68_p3), %s189_s24, 4 }
   0xe   : > { %s193_s29 = scalar_lea.vmem (%p68_p3), %s745_s1, %s519_s25  ;;  %s191_s30 = scalar_lea.vmem (%p68_p3), [#allocation5], %s518_s26 }
   0xf   : > { %v210_v0 = vld [vmem:[%s193_s29] sm:$0xf] (%p68_p3)  ;;  %v212_v1 = vld [vmem:[%s193_s29 + $0x10] sm:$0xf] (%p68_p3) }
  0x10   : > { %211 = vst [vmem:[%s191_s30] sm:$0xf] (%p68_p3), %v210_v0  ;;  %v214_v2 = vld [vmem:[%s193_s29 + $0x20] sm:$0xf] (%p68_p3)  ;;  %v216_v3 = vld [vmem:[%s193_s29 + $0x30] sm:$0xf] (%p68_p3) }
  0x11   : > { %213 = vst [vmem:[%s191_s30 + $0x4] sm:$0xf] %v212_v1 }
  0x12   : > { %215 = vst [vmem:[%s191_s30 + $0x8] sm:$0xf] %v214_v2 }
  0x13   : > { %217 = vst [vmem:[%s191_s30 + $0xc] sm:$0xf] %v216_v3 }
  0x14 PF: > { %p520_p6 = scmp.ge.s32.totalorder %s629_s19, 1  ;;  %p254_p7 = scmp.lt.s32.totalorder %s629_s19, 5 }
  0x16   : > { %p255_p8 = pnand %p520_p6, %p254_p7 }
  0x17   : > { %s261_s5 = sand.u32 (!%p255_p8), 1, %s613_s15   ;;  %p300_p9 = scmp.lt.s32.totalorder (!%p255_p8), %s621_s17, 3 }
  0x18   : > { %258 = sbr.rel (%p255_p8) target bundleno = 560 (0x230), region = 73  ;;  %s521_s6 = sshll.u32 (!%p255_p8), %s261_s5, 4 }
  0x19   : > { %s263_s11 = scalar_lea.vmem (!%p255_p8), [#allocation5], %s521_s6  ;;  %p522_p10 = scmp.ne.s32.totalorder (!%p255_p8), %s621_s17, 0 }
  0x1d   : > { %s707_s7 = scalar_select %p300_p9, %s621_s17, 3 }
  0x1e   : > { %315 = sbr.rel (%p522_p10) target bundleno = 39 (0x27), region = 81 }
  0x1f   : > { %s302_s10 = scalar_lea.vmem %s746_s2, %s707_s7 }
  0x23   : > { %vm316_vm0 = vcmask 7168   ;;  %v631_v4 = vmov -inf   ;;  %v632_v5 = vmov 0.0  }
  0x24   : > { %317 = vst.msk [vmem:[#allocation2] sm:$0xff] %vm316_vm0, %v631_v4 }
  0x25   : > { %318 = vst.msk [vmem:[#allocation3] sm:$0xff] %vm316_vm0, %v632_v5 }
  0x26   : > { %319 = vst.msk [vmem:[#allocation4] sm:$0xff] %vm316_vm0, %v632_v5 }
  0x27 PF: > { %v538_v6 = vld [vmem:[%s263_s11 + $0x8] sm:$0xff]  ;;  %v633_v7 = vmov 0   ;;  %v537_v9 = vld [vmem:[%s263_s11] sm:$0xff]  ;;  %vm341_vm1 = vcmask 261120   ;;  %v359_v11 = vlaneseq  ;;  %s532_s21 = sshll.u32 %s621_s17, 7  ;;  %vm373_vm3 = vcmask 7168  }
  0x28   : > { %583 = vset.pattern.permute.xlu1 %v633_v7  ;;  %v363_v8 = vld [vmem:[%s747_s3] sm:$0xff]  ;;  %582 = vset.pattern.permute.xlu0 %v633_v7  ;;  %v361_v13 = vstv %s532_s21  ;;  %p533_p11 = scmp.ne.s32.totalorder %s621_s17, 3 }
  0x29   : > { %351 = vmatpush.bf16.msra.mxu0 %v538_v6  ;;  %366 = vperm.xlu1 %583, %v363_v8   ;;  %v320_v10 = vld [vmem:[%s744_s0] sm:$0xf]  ;;  %v360_v12 = vand.u32 127, %v359_v11 }
  0x2a   : > { %v584_v15 = vld [vmem:[%s302_s10] ss:$0 sm:$0xff] }
  0x2b   : > { %v362_v14 = vadd.s32 %v361_v13, %v360_v12  ;;  %v375_v21 = vld [vmem:[#allocation2] sm:$0xff] }
  0x2c   : > { %v379_v34 = vld [vmem:[#allocation3] sm:$0xff] }
  0x2d   : > { %352 = vmatpush.bf16.msra.mxu0 %v537_v9  ;;  %v364_v22 = vld [vmem:[#allocation4] sm:$0xff] }
  0x30   : > { %531 = vmatmul.msk.bf16.vlgmr.msra.gmra.mxu0 %vm341_vm1, %v320_v10 }
  0x9b   : > { %v367_v16 = vpop.permute.xlu1 %366 }
  0x9c   : > { %vm368_vm2 = vcmp.eq.s32.totalorder %v362_v14, %v367_v16 }
  0xad   : > { %v354_v17 = vpop.f32.mrf.mxu0 }
  0xae   : > { %v355_v18 = vadd.f32 %v584_v15, %v354_v17 }
  0xb0   : > { %376 = vmax.xlane.f32.xlu0 %v355_v18  ;;  %v369_v19 = vsel %vm368_vm2, %v355_v18, 0.0 }
  0xb1   : > { %370 = vadd.xlane.f32.xlu1 %v369_v19 }
  0xb5   : > { %v356_v20 = vpop.f32.mrf.mxu0 }
 0x123   : > { %v377_v23 = vpop.xlane.xlu0 %376 }
 0x124   : > { %v378_v24 = vmax.f32 %v375_v21, %v377_v23  ;;  %v371_v25 = vpop.xlane.xlu1 %370 }
 0x125   : > { %v372_v26 = vadd.f32 %v371_v25, %v364_v22 }
 0x126   : > { %v380_v27 = vsub.f32 %v375_v21, %v378_v24  ;;  %396 = vst.msk [vmem:[#allocation2] sm:$0xff] %vm373_vm3, %v378_v24  ;;  %386 = vperm.xlu0 %582, %v378_v24  }
 0x127   : > { %374 = vst.msk [vmem:[#allocation4] sm:$0xff] %vm373_vm3, %v372_v26 }
 0x128   : > { %v381_v32 = vmul.f32 1.442695, %v380_v27 }
 0x198   : > { %v387_v28 = vpop.permute.xlu0 %386 }
 0x199   : > { %v389_v29 = vsub.f32 %v355_v18, %v387_v28 }
 0x19b   : > { %v390_v30 = vmul.f32 1.442695, %v389_v29 }
 0x19d   : > { %585 = vpow2.f32 %v390_v30 }
 0x19e   : > { %587 = vpow2.f32 %v381_v32 }
 0x1a3   : > { %v586_v31 = vpop.eup %585 }
 0x1a4   : > { %392 = vadd.xlane.f32.xlu2 %v586_v31  ;;  %v588_v33 = vpop.eup %587 }
 0x1a5   : > { %v383_v35 = vmul.f32 %v588_v33, %v379_v34 }
 0x216   : > { %400 = sbr.rel (%p533_p11) target bundleno = 560 (0x230), region = 85 }
 0x217   : > { %v393_v36 = vpop.xlane.xlu2 %392 }
 0x218   : > { %v394_v37 = vadd.f32 %v393_v36, %v383_v35 }
 0x21a   : > { %395 = vst.msk [vmem:[#allocation3] sm:$0xff] %vm373_vm3, %v394_v37 }
 0x21b   : > { %v401_v40 = vld [vmem:[#allocation2] sm:$0xff]  ;;  %v406_v42 = vld [vmem:[#allocation4] sm:$0xff] }
 0x221   : > { %v402_v38 = vld [vmem:[#allocation3] sm:$0xff] }
 0x222   : > { %589 = vlog2.f32 %v402_v38 }
 0x228   : > { %v590_v39 = vpop.eup %589 }
 0x229   : > { %v404_v41 = vmul.f32 0.6931472, %v590_v39 }
 0x22b   : > { %v405_v43 = vadd.f32 %v404_v41, %v401_v40 }
 0x22d   : > { %v407_v44 = vsub.f32 %v405_v43, %v406_v42 }
 0x22f   : > { %408 = vst.msk [vmem:[%s748_s4] sm:$0xff] %vm373_vm3, %v407_v44 }
 0x230 PF: > { %s14_s19 = sadd.s32 1, %s629_s19   ;;  %s749_s15 = smov %s617_s16 }
 0x231   : > { %p11_p12 = scmp.ge.s32.totalorder %s14_s19, 6   ;;  %s750_s16 = smov %s694_s23 }
 0x232   : > { %s751_s17 = smov %s625_s18  ;;  %s752_s18 = smov %s754_s20 }
 0x233   :  { %13 = sbr.rel (!%p11_p12) target bundleno = 3 (0x3), region = 129 }

</bundles_post_ra>
